<compile_context>
chip_gen: v7x
topology: tpu7x:2x2x1
jax: 0.10.0
libtpu: 0.0.40
codegen_flags: <defaults>
</compile_context>

<pallas_src>
import math

import jax
import jax.numpy as jnp
from jax.experimental import pallas as pl
from jax.experimental.pallas import tpu as pltpu  # noqa: F401  (TPU backend)

# ---------------- configuration (small but consistent with __init__) -------
BATCH = 2
SEQ_LEN = 16          # configs.seq_len
PRED_LEN = 8          # configs.pred_len
C_IN = 4              # configs.enc_in
KF = 4                # configs.kf
LAST_STEPS = 4        # configs.last_steps
JFT = KF + LAST_STEPS                 # configs.d_model = kf + last_steps
FS = 2.0                              # configs.feature_scaler
DCT_HIDDEN = int(FS * JFT)
W_LIN = 0.5                           # configs.w_lin
EPS = 1e-5
_SQRT2 = math.sqrt(2.0)

BC = BATCH * C_IN                     # batch folded into the lane axis

# --------------- packed weight-slab layouts (lane-packed) -------------------
# bf16 matmul-weight slab: name -> (row, col, (rows, cols)); row offsets are
# 16-aligned (bf16 sublane-packing) so every slice starts on a tile boundary.
_W_LAYOUT = {
    "w2":   (0,  0,  (SEQ_LEN, DCT_HIDDEN)),   # dct_ffn[3].weight  [S, H]
    "w1":   (0,  16, (DCT_HIDDEN, JFT)),       # dct_ffn[0].weight  [H, JFT]
    "mkT":  (16, 0,  (JFT, SEQ_LEN)),          # DCT-II rows + tail one-hots
    "wtr":  (16, 16, (PRED_LEN, JFT)),         # tr_proj.weight
    "wlin": (32, 0,  (PRED_LEN, SEQ_LEN)),     # lin_proj.weight
}
W_ROWS, W_COLS = 48, 24

# f32 affine/bias slab (8-aligned rows, pieces lane-packed side by side).
_A_LAYOUT = {
    "gew":   (0, 0,  (JFT, BC)),       # Encoder final norm * w_dec (per lane)
    "bew":   (0, 8,  (JFT, BC)),
    "g1":    (0, 16, (JFT, BC)),       # dct_norm_1 affine (lane-broadcast)
    "b1":    (0, 24, (JFT, BC)),
    "g2w":   (8, 0,  (SEQ_LEN, BC)),   # dct_norm_2 * w_dec_1 (per lane)
    "b2w":   (8, 8,  (SEQ_LEN, BC)),
    "bcomb": (8, 16, (PRED_LEN, BC)),  # w_dec_1*b_lin + w_dec*b_tr (per lane)
}
A_ROWS, A_COLS = 24, 32


def _piece(ref, layout, name):
    r, c, (nr, nc) = layout[name]
    return ref[r:r + nr, c:c + nc]     # static slice of a packed slab


# ---------------------------- kernel helpers --------------------------------
def _ln0(v):
    """LayerNorm statistics over axis 0 (feature/sublane axis), per column."""
    m = jnp.mean(v, axis=0, keepdims=True)
    var = jnp.mean((v - m) ** 2, axis=0, keepdims=True)
    return (v - m) * jax.lax.rsqrt(var + EPS)


def _gelu_exact(x):
    # nn.GELU() default (erf form)
    return 0.5 * x * (1.0 + jax.lax.erf(x / _SQRT2))


# ------------------------------- kernel --------------------------------------
def lgnet_kernel(x_ref, w_ref, a_ref, o_ref):
    f32, bf16 = jnp.float32, jnp.bfloat16

    # Fold batch into the lane axis: [SEQ_LEN, B*C_IN]; lane l = b*C_IN + c.
    x = jnp.concatenate([x_ref[b] for b in range(BATCH)], axis=1).astype(f32)

    # bf16 matmul weights (lane-packed slab, native PyTorch [out, in] layout).
    mk_t = _piece(w_ref, _W_LAYOUT, "mkT")     # [JFT, S]
    w1 = _piece(w_ref, _W_LAYOUT, "w1")        # [H, JFT]
    w2 = _piece(w_ref, _W_LAYOUT, "w2")        # [S, H]
    wlin = _piece(w_ref, _W_LAYOUT, "wlin")    # [P, S]
    wtr = _piece(w_ref, _W_LAYOUT, "wtr")      # [P, JFT]
    # f32 affine / bias pieces.
    g1 = _piece(a_ref, _A_LAYOUT, "g1")        # [JFT, B*C]
    b1 = _piece(a_ref, _A_LAYOUT, "b1")
    gew = _piece(a_ref, _A_LAYOUT, "gew")      # [JFT, B*C]
    bew = _piece(a_ref, _A_LAYOUT, "bew")
    g2w = _piece(a_ref, _A_LAYOUT, "g2w")      # [S, B*C]
    b2w = _piece(a_ref, _A_LAYOUT, "b2w")
    bcomb = _piece(a_ref, _A_LAYOUT, "bcomb")  # [P, B*C]

    # ---- __dct branch: DCT-II (torch_dct.dct, norm=None) + tail concat fused
    # into one basis matmul (one-hot rows reproduce x[..., -last_steps:]).
    new_x = jnp.dot(mk_t, x.astype(bf16), preferred_element_type=f32)   # [JFT, BC]

    # Shared LayerNorm statistics of new_x: dct_norm_1 and the Encoder's final
    # norm differ only in their affine parameters.
    nrm = _ln0(new_x)
    n1 = nrm * g1 + b1                                                   # dct_norm_1
    # ---- transformer branch --------------------------------------------------
    # TODO(synk): EncoderLayer / LowRankAttention bodies are not defined in the
    # provided source; only the Encoder's final LayerNorm is applied here.
    enc = nrm * gew + bew                 # Encoder norm (w_dec pre-folded), [JFT, BC]

    h = _gelu_exact(jnp.dot(w1, n1.astype(bf16), preferred_element_type=f32))
    fw = jax.nn.sigmoid(jnp.dot(w2, h.astype(bf16), preferred_element_type=f32))
    f_weight = _ln0(fw) * g2w + b2w       # dct_norm_2 (w_dec_1 pre-folded), [S, BC]

    # ---- local/global branch -------------------------------------------------
    # TODO(synk): LocalGlobalBlock definition is not provided; modeled as the
    # frequency gate x_enc * f_weight feeding lin_proj.
    lg = x * f_weight                                                    # [S, BC]

    # ---- lin_proj + tr_proj + biases + decoder weighting: two accumulated
    # dots (no sublane concat / VMEM temp copy).
    out = (jnp.dot(wlin, lg.astype(bf16), preferred_element_type=f32)
           + jnp.dot(wtr, enc.astype(bf16), preferred_element_type=f32)
           + bcomb)                                                      # [P, BC]

    # Native output layout [B, PRED_LEN, C_IN] — no wrapper transpose needed.
    for b in range(BATCH):
        o_ref[b] = out[:, b * C_IN:(b + 1) * C_IN]


# --------------------------- parameters / packing ----------------------------
def _snap_bf16(a):
    # Example matmul params are chosen bf16-representable so the f32 reference
    # isolates the kernel's activation-cast drift (weights add no quant error).
    return a.astype(jnp.bfloat16).astype(jnp.float32)


def make_params(key):
    """Raw parameters in PyTorch layout (nn.Linear weight = [out, in])."""
    ks = jax.random.split(key, 14)
    f32 = jnp.float32
    w1 = _snap_bf16(0.1 * jax.random.normal(ks[0], (DCT_HIDDEN, JFT), f32))   # dct_ffn[0]
    w2 = _snap_bf16(0.1 * jax.random.normal(ks[1], (SEQ_LEN, DCT_HIDDEN), f32))  # dct_ffn[3]
    g1 = 1.0 + 0.1 * jax.random.normal(ks[2], (JFT,), f32)            # dct_norm_1
    b1 = 0.1 * jax.random.normal(ks[3], (JFT,), f32)
    g2 = 1.0 + 0.1 * jax.random.normal(ks[4], (SEQ_LEN,), f32)        # dct_norm_2
    b2 = 0.1 * jax.random.normal(ks[5], (SEQ_LEN,), f32)
    genc = 1.0 + 0.1 * jax.random.normal(ks[6], (JFT,), f32)          # Encoder final norm
    benc = 0.1 * jax.random.normal(ks[7], (JFT,), f32)
    wtr = _snap_bf16(0.1 * jax.random.normal(ks[8], (PRED_LEN, JFT), f32))    # tr_proj
    btr = 0.01 * jax.random.normal(ks[9], (PRED_LEN,), f32)
    wlin = _snap_bf16(0.1 * jax.random.normal(ks[10], (PRED_LEN, SEQ_LEN), f32))  # lin_proj
    blin = 0.01 * jax.random.normal(ks[11], (PRED_LEN,), f32)
    # w_dec_1 / w_dec are initialised to w_lin in the module; perturb slightly
    # so the per-channel fold is exercised (they are trainable parameters).
    wd1 = W_LIN + 0.05 * jax.random.normal(ks[12], (C_IN,), f32)
    wd = W_LIN + 0.05 * jax.random.normal(ks[13], (C_IN,), f32)
    return (w1, w2, g1, b1, g2, b2, genc, benc, wtr, btr, wlin, blin, wd1, wd)


def pack_slabs(params):
    """One-time packing: bf16 matmul-weight slab + f32 affine/bias slab."""
    (w1, w2, g1, b1, g2, b2, genc, benc,
     wtr, btr, wlin, blin, wd1, wd) = params
    f32 = jnp.float32

    # DCT-II basis (norm=None), transposed & truncated to KF rows, extended
    # with one-hot rows implementing the `x[..., -last_steps:]` concat exactly.
    n = jnp.arange(SEQ_LEN, dtype=f32)[None, :]
    k = jnp.arange(KF, dtype=f32)[:, None]
    dct_rows = 2.0 * jnp.cos(jnp.pi * (2.0 * n + 1.0) * k / (2.0 * SEQ_LEN))  # [KF, S]
    sel = jnp.zeros((LAST_STEPS, SEQ_LEN), f32).at[
        jnp.arange(LAST_STEPS), SEQ_LEN - LAST_STEPS + jnp.arange(LAST_STEPS)].set(1.0)
    mk_t = jnp.concatenate([dct_rows, sel], axis=0)                            # [JFT, S]

    # Per-lane (= batch*channel) decoder weights.
    wd1_l = jnp.tile(wd1, BATCH)
    wd_l = jnp.tile(wd, BATCH)

    wvals = {"mkT": mk_t, "w1": w1, "w2": w2, "wlin": wlin, "wtr": wtr}
    avals = {
        "g1": jnp.broadcast_to(g1[:, None], (JFT, BC)),
        "b1": jnp.broadcast_to(b1[:, None], (JFT, BC)),
        "g2w": g2[:, None] * wd1_l[None, :],
        "b2w": b2[:, None] * wd1_l[None, :],
        "gew": genc[:, None] * wd_l[None, :],
        "bew": benc[:, None] * wd_l[None, :],
        "bcomb": blin[:, None] * wd1_l[None, :] + btr[:, None] * wd_l[None, :],
    }

    wslab = jnp.zeros((W_ROWS, W_COLS), jnp.bfloat16)
    for name, (r, c, (nr, nc)) in _W_LAYOUT.items():
        wslab = wslab.at[r:r + nr, c:c + nc].set(wvals[name].astype(jnp.bfloat16))
    aslab = jnp.zeros((A_ROWS, A_COLS), f32)
    for name, (r, c, (nr, nc)) in _A_LAYOUT.items():
        aslab = aslab.at[r:r + nr, c:c + nc].set(avals[name].astype(f32))
    return wslab, aslab


# ------------------------------- wrapper --------------------------------------
@jax.jit
def lgnet_forward(x, wslab, aslab):
    """x: [BATCH, SEQ_LEN, C_IN] (same layout as the PyTorch forward input)."""
    return pl.pallas_call(
        lgnet_kernel,
        out_shape=jax.ShapeDtypeStruct((BATCH, PRED_LEN, C_IN), jnp.float32),
        # no grid / BlockSpecs: single program, whole arrays as VMEM blocks
    )(x, wslab, aslab)


# --------------------- pure-JAX reference (for validation) --------------------
def lgnet_reference(x, params):
    (w1, w2, g1, b1, g2, b2, genc, benc,
     wtr, btr, wlin, blin, wd1, wd) = params
    x_enc = jnp.swapaxes(x, -1, -2).astype(jnp.float32)                        # [B, C, S]

    n = jnp.arange(SEQ_LEN, dtype=jnp.float32)[:, None]
    k = jnp.arange(KF, dtype=jnp.float32)[None, :]
    basis = 2.0 * jnp.cos(jnp.pi * (2.0 * n + 1.0) * k / (2.0 * SEQ_LEN))      # [S, KF]
    freq_k = x_enc @ basis
    new_x = jnp.concatenate([freq_k, x_enc[..., SEQ_LEN - LAST_STEPS:]], axis=-1)

    def ln(v, g, bb):
        m = jnp.mean(v, axis=-1, keepdims=True)
        var = jnp.mean((v - m) ** 2, axis=-1, keepdims=True)
        return (v - m) * jax.lax.rsqrt(var + EPS) * g + bb

    z = ln(new_x, g1, b1) @ w1.T
    h = 0.5 * z * (1.0 + jax.lax.erf(z / _SQRT2))
    f_weight = ln(jax.nn.sigmoid(h @ w2.T), g2, b2)                            # [B, C, S]

    enc_out = ln(new_x, genc, benc)                                            # [B, C, JFT]
    tr = jnp.swapaxes(enc_out @ wtr.T + btr, -1, -2)                           # [B, P, C]
    g_out = jnp.swapaxes((x_enc * f_weight) @ wlin.T + blin, -1, -2)           # [B, P, C]
    return g_out * wd1 + tr * wd


# --------------------------------- main ----------------------------------------
if __name__ == "__main__":
    key = jax.random.PRNGKey(0)
    k_x, k_p = jax.random.split(key)
    x = jax.random.normal(k_x, (BATCH, SEQ_LEN, C_IN), jnp.float32)
    params = make_params(k_p)
    wslab, aslab = pack_slabs(params)   # one-time weight packing

    out = lgnet_forward(x, wslab, aslab)
    jax.block_until_ready(out)
    assert out.shape == (BATCH, PRED_LEN, C_IN)
    assert bool(jnp.all(jnp.isfinite(out)))

    ref = lgnet_reference(x, params)
    max_err = float(jnp.max(jnp.abs(out - ref)))
    # bf16 matmul operands (activations cast at the dot boundary, f32 accum):
    # expected drift is well inside 2e-2 against the pure-f32 reference.
    assert bool(jnp.allclose(out, ref, atol=2e-2, rtol=2e-2)), max_err
    print("KERNEL_OK")
</pallas_src>

<mosaic_0001>
module attributes {stable_mosaic.version = 11 : i64} {
  func.func @lgnet_kernel(%arg0: memref<2x16x4xf32, #tpu.memory_space<vmem>>, %arg1: memref<48x24xbf16, #tpu.memory_space<vmem>>, %arg2: memref<24x32xf32, #tpu.memory_space<vmem>>, %arg3: memref<2x8x4xf32, #tpu.memory_space<vmem>>) attributes {dimension_semantics = [], scalar_prefetch = 0 : i64, scratch_operands = 0 : i64, tpu.core_type = #tpu.core_type<tc>} {
    %c0 = arith.constant 0 : index
    %c0_0 = arith.constant 0 : index
    %c0_1 = arith.constant 0 : index
    %0 = vector.load %arg0[%c0, %c0_0, %c0_1] : memref<2x16x4xf32, #tpu.memory_space<vmem>>, vector<1x16x4xf32>
    %1 = vector.shape_cast %0 : vector<1x16x4xf32> to vector<16x4xf32>
    %c1 = arith.constant 1 : index
    %c0_2 = arith.constant 0 : index
    %c0_3 = arith.constant 0 : index
    %2 = vector.load %arg0[%c1, %c0_2, %c0_3] : memref<2x16x4xf32, #tpu.memory_space<vmem>>, vector<1x16x4xf32>
    %3 = vector.shape_cast %2 : vector<1x16x4xf32> to vector<16x4xf32>
    %4 = tpu.concatenate %1, %3 in 1 : vector<16x4xf32>, vector<16x4xf32> -> vector<16x8xf32>
    %c16 = arith.constant 16 : index
    %c0_4 = arith.constant 0 : index
    %5 = vector.load %arg1[%c16, %c0_4] : memref<48x24xbf16, #tpu.memory_space<vmem>>, vector<8x16xbf16>
    %c0_5 = arith.constant 0 : index
    %c16_6 = arith.constant 16 : index
    %6 = vector.load %arg1[%c0_5, %c16_6] : memref<48x24xbf16, #tpu.memory_space<vmem>>, vector<16x8xbf16>
    %c0_7 = arith.constant 0 : index
    %c0_8 = arith.constant 0 : index
    %7 = vector.load %arg1[%c0_7, %c0_8] : memref<48x24xbf16, #tpu.memory_space<vmem>>, vector<16x16xbf16>
    %c32 = arith.constant 32 : index
    %c0_9 = arith.constant 0 : index
    %8 = vector.load %arg1[%c32, %c0_9] : memref<48x24xbf16, #tpu.memory_space<vmem>>, vector<8x16xbf16>
    %c16_10 = arith.constant 16 : index
    %c16_11 = arith.constant 16 : index
    %9 = vector.load %arg1[%c16_10, %c16_11] : memref<48x24xbf16, #tpu.memory_space<vmem>>, vector<8x8xbf16>
    %c0_12 = arith.constant 0 : index
    %c16_13 = arith.constant 16 : index
    %10 = vector.load %arg2[%c0_12, %c16_13] : memref<24x32xf32, #tpu.memory_space<vmem>>, vector<8x8xf32>
    %c0_14 = arith.constant 0 : index
    %c24 = arith.constant 24 : index
    %11 = vector.load %arg2[%c0_14, %c24] : memref<24x32xf32, #tpu.memory_space<vmem>>, vector<8x8xf32>
    %c0_15 = arith.constant 0 : index
    %c0_16 = arith.constant 0 : index
    %12 = vector.load %arg2[%c0_15, %c0_16] : memref<24x32xf32, #tpu.memory_space<vmem>>, vector<8x8xf32>
    %c0_17 = arith.constant 0 : index
    %c8 = arith.constant 8 : index
    %13 = vector.load %arg2[%c0_17, %c8] : memref<24x32xf32, #tpu.memory_space<vmem>>, vector<8x8xf32>
    %c8_18 = arith.constant 8 : index
    %c0_19 = arith.constant 0 : index
    %14 = vector.load %arg2[%c8_18, %c0_19] : memref<24x32xf32, #tpu.memory_space<vmem>>, vector<16x8xf32>
    %c8_20 = arith.constant 8 : index
    %c8_21 = arith.constant 8 : index
    %15 = vector.load %arg2[%c8_20, %c8_21] : memref<24x32xf32, #tpu.memory_space<vmem>>, vector<16x8xf32>
    %c8_22 = arith.constant 8 : index
    %c16_23 = arith.constant 16 : index
    %16 = vector.load %arg2[%c8_22, %c16_23] : memref<24x32xf32, #tpu.memory_space<vmem>>, vector<8x8xf32>
    %17 = arith.truncf %4 : vector<16x8xf32> to vector<16x8xbf16>
    %cst = arith.constant dense<0.000000e+00> : vector<8x8xf32>
    %18 = tpu.matmul %5, %17, %cst {dimension_numbers = #tpu.dot_dimension_numbers<[1], [0], [0], [1], [0, 0, 1, 1], [], []>} : vector<8x16xbf16>, vector<16x8xbf16>, vector<8x8xf32> -> vector<8x8xf32>
    %cst_24 = arith.constant dense<0.000000e+00> : vector<8xf32>
    %19 = vector.multi_reduction <add>, %18, %cst_24 [0] : vector<8x8xf32> to vector<8xf32>
    %20 = vector.shape_cast %19 : vector<8xf32> to vector<1x8xf32>
    %cst_25 = arith.constant 8.000000e+00 : f32
    %21 = vector.broadcast %cst_25 : f32 to vector<1x8xf32>
    %22 = arith.divf %20, %21 : vector<1x8xf32>
    %23 = vector.broadcast %22 : vector<1x8xf32> to vector<8x8xf32>
    %24 = arith.subf %18, %23 : vector<8x8xf32>
    %25 = arith.mulf %24, %24 : vector<8x8xf32>
    %cst_26 = arith.constant dense<0.000000e+00> : vector<8xf32>
    %26 = vector.multi_reduction <add>, %25, %cst_26 [0] : vector<8x8xf32> to vector<8xf32>
    %27 = vector.shape_cast %26 : vector<8xf32> to vector<1x8xf32>
    %cst_27 = arith.constant 8.000000e+00 : f32
    %28 = vector.broadcast %cst_27 : f32 to vector<1x8xf32>
    %29 = arith.divf %27, %28 : vector<1x8xf32>
    %30 = vector.broadcast %22 : vector<1x8xf32> to vector<8x8xf32>
    %31 = arith.subf %18, %30 : vector<8x8xf32>
    %cst_28 = arith.constant 9.99999974E-6 : f32
    %32 = vector.broadcast %cst_28 : f32 to vector<1x8xf32>
    %33 = arith.addf %29, %32 : vector<1x8xf32>
    %34 = math.rsqrt %33 : vector<1x8xf32>
    %35 = vector.broadcast %34 : vector<1x8xf32> to vector<8x8xf32>
    %36 = arith.mulf %31, %35 : vector<8x8xf32>
    %37 = arith.mulf %36, %10 : vector<8x8xf32>
    %38 = arith.addf %37, %11 : vector<8x8xf32>
    %39 = arith.mulf %36, %12 : vector<8x8xf32>
    %40 = arith.addf %39, %13 : vector<8x8xf32>
    %41 = arith.truncf %38 : vector<8x8xf32> to vector<8x8xbf16>
    %cst_29 = arith.constant dense<0.000000e+00> : vector<16x8xf32>
    %42 = tpu.matmul %6, %41, %cst_29 {dimension_numbers = #tpu.dot_dimension_numbers<[1], [0], [0], [1], [0, 0, 1, 1], [], []>} : vector<16x8xbf16>, vector<8x8xbf16>, vector<16x8xf32> -> vector<16x8xf32>
    %cst_30 = arith.constant 5.000000e-01 : f32
    %43 = vector.broadcast %cst_30 : f32 to vector<16x8xf32>
    %44 = arith.mulf %43, %42 : vector<16x8xf32>
    %cst_31 = arith.constant 1.41421354 : f32
    %45 = vector.broadcast %cst_31 : f32 to vector<16x8xf32>
    %46 = arith.divf %42, %45 : vector<16x8xf32>
    %47 = math.erf %46 : vector<16x8xf32>
    %cst_32 = arith.constant 1.000000e+00 : f32
    %48 = vector.broadcast %cst_32 : f32 to vector<16x8xf32>
    %49 = arith.addf %48, %47 : vector<16x8xf32>
    %50 = arith.mulf %44, %49 : vector<16x8xf32>
    %51 = arith.truncf %50 : vector<16x8xf32> to vector<16x8xbf16>
    %cst_33 = arith.constant dense<0.000000e+00> : vector<16x8xf32>
    %52 = tpu.matmul %7, %51, %cst_33 {dimension_numbers = #tpu.dot_dimension_numbers<[1], [0], [0], [1], [0, 0, 1, 1], [], []>} : vector<16x16xbf16>, vector<16x8xbf16>, vector<16x8xf32> -> vector<16x8xf32>
    %53 = arith.negf %52 : vector<16x8xf32>
    %54 = math.exp %53 : vector<16x8xf32>
    %cst_34 = arith.constant 1.000000e+00 : f32
    %55 = vector.broadcast %cst_34 : f32 to vector<16x8xf32>
    %56 = arith.addf %55, %54 : vector<16x8xf32>
    %57 = arith.divf %55, %56 : vector<16x8xf32>
    %cst_35 = arith.constant dense<0.000000e+00> : vector<8xf32>
    %58 = vector.multi_reduction <add>, %57, %cst_35 [0] : vector<16x8xf32> to vector<8xf32>
    %59 = vector.shape_cast %58 : vector<8xf32> to vector<1x8xf32>
    %cst_36 = arith.constant 1.600000e+01 : f32
    %60 = vector.broadcast %cst_36 : f32 to vector<1x8xf32>
    %61 = arith.divf %59, %60 : vector<1x8xf32>
    %62 = vector.broadcast %61 : vector<1x8xf32> to vector<16x8xf32>
    %63 = arith.subf %57, %62 : vector<16x8xf32>
    %64 = arith.mulf %63, %63 : vector<16x8xf32>
    %cst_37 = arith.constant dense<0.000000e+00> : vector<8xf32>
    %65 = vector.multi_reduction <add>, %64, %cst_37 [0] : vector<16x8xf32> to vector<8xf32>
    %66 = vector.shape_cast %65 : vector<8xf32> to vector<1x8xf32>
    %cst_38 = arith.constant 1.600000e+01 : f32
    %67 = vector.broadcast %cst_38 : f32 to vector<1x8xf32>
    %68 = arith.divf %66, %67 : vector<1x8xf32>
    %69 = vector.broadcast %61 : vector<1x8xf32> to vector<16x8xf32>
    %70 = arith.subf %57, %69 : vector<16x8xf32>
    %cst_39 = arith.constant 9.99999974E-6 : f32
    %71 = vector.broadcast %cst_39 : f32 to vector<1x8xf32>
    %72 = arith.addf %68, %71 : vector<1x8xf32>
    %73 = math.rsqrt %72 : vector<1x8xf32>
    %74 = vector.broadcast %73 : vector<1x8xf32> to vector<16x8xf32>
    %75 = arith.mulf %70, %74 : vector<16x8xf32>
    %76 = arith.mulf %75, %14 : vector<16x8xf32>
    %77 = arith.addf %76, %15 : vector<16x8xf32>
    %78 = arith.mulf %4, %77 : vector<16x8xf32>
    %79 = arith.truncf %78 : vector<16x8xf32> to vector<16x8xbf16>
    %cst_40 = arith.constant dense<0.000000e+00> : vector<8x8xf32>
    %80 = tpu.matmul %8, %79, %cst_40 {dimension_numbers = #tpu.dot_dimension_numbers<[1], [0], [0], [1], [0, 0, 1, 1], [], []>} : vector<8x16xbf16>, vector<16x8xbf16>, vector<8x8xf32> -> vector<8x8xf32>
    %81 = arith.truncf %40 : vector<8x8xf32> to vector<8x8xbf16>
    %cst_41 = arith.constant dense<0.000000e+00> : vector<8x8xf32>
    %82 = tpu.matmul %9, %81, %cst_41 {dimension_numbers = #tpu.dot_dimension_numbers<[1], [0], [0], [1], [0, 0, 1, 1], [], []>} : vector<8x8xbf16>, vector<8x8xbf16>, vector<8x8xf32> -> vector<8x8xf32>
    %83 = arith.addf %80, %82 : vector<8x8xf32>
    %84 = arith.addf %83, %16 : vector<8x8xf32>
    %85 = vector.extract_strided_slice %84 {offsets = [0, 0], sizes = [8, 4], strides = [1, 1]} : vector<8x8xf32> to vector<8x4xf32>
    %c0_42 = arith.constant 0 : index
    %c0_43 = arith.constant 0 : index
    %c0_44 = arith.constant 0 : index
    %86 = vector.load %arg3[%c0_42, %c0_43, %c0_44] : memref<2x8x4xf32, #tpu.memory_space<vmem>>, vector<1x8x4xf32>
    %87 = vector.shape_cast %86 : vector<1x8x4xf32> to vector<8x4xf32>
    %88 = vector.shape_cast %85 : vector<8x4xf32> to vector<1x8x4xf32>
    tpu.vector_store %arg3[%c0_42, %c0_43, %c0_44], %88 {strides = array<i32>} : memref<2x8x4xf32, #tpu.memory_space<vmem>>, vector<1x8x4xf32>,
    %89 = vector.extract_strided_slice %84 {offsets = [0, 4], sizes = [8, 4], strides = [1, 1]} : vector<8x8xf32> to vector<8x4xf32>
    %c1_45 = arith.constant 1 : index
    %c0_46 = arith.constant 0 : index
    %c0_47 = arith.constant 0 : index
    %90 = vector.load %arg3[%c1_45, %c0_46, %c0_47] : memref<2x8x4xf32, #tpu.memory_space<vmem>>, vector<1x8x4xf32>
    %91 = vector.shape_cast %90 : vector<1x8x4xf32> to vector<8x4xf32>
    %92 = vector.shape_cast %89 : vector<8x4xf32> to vector<1x8x4xf32>
    tpu.vector_store %arg3[%c1_45, %c0_46, %c0_47], %92 {strides = array<i32>} : memref<2x8x4xf32, #tpu.memory_space<vmem>>, vector<1x8x4xf32>,
    return
  }
}

</mosaic_0001>

<bundles_post_ra>
// kernel: lgnet_forward.1
= control target key start
LH: loop header
LB: loop body
LE: loop exit
PB: predicated region body
PF: predicated region fallthrough
CT: control target
= control target key end

     0   :  { %v475_v1 = vmov 0.0   ;;  %vm476_vm0 = vmmov 0   ;;  %s477_s14 = smov 4   ;;  %s478_s19 = smov 112   ;;  %vm28_vm1 = vcmask 31744   ;;  %vm39_vm2 = vcmask 130048   ;;  %s599_s0 = inlined_call_operand.vmem [shape: f32[2,16,4], index: 0, kind: input, shape index: {}]   ;;  %s600_s2 = inlined_call_operand.vmem [shape: f32[24,32], index: 2, kind: input, shape index: {}]   ;;  %s601_s1 = inlined_call_operand.vmem [shape: bf16[48,24], index: 1, kind: input, shape index: {}]   ;;  %s602_s3 = inlined_call_operand.vmem [shape: f32[2,8,4], index: 3, kind: output, shape index: {}]  }
   0x1   :  { %v398_v0 = vld [vmem:[%s599_s0 + $0x10] sm:$0xff]  ;;  %420 = vmatprep.subr.bf16.mxu0 %v475_v1  ;;  %422 = vmatprep.mubr.msk.bf16.mxu0 %vm476_vm0, %v475_v1  ;;  %v35_v2 = vld [vmem:[%s600_s2] sm:$0xff]  ;;  %v399_v3 = vld [vmem:[%s599_s0 + $0x18] sm:$0xff]  ;;  %s479_s22 = smov 104   ;;  %s480_s25 = smov 120   ;;  %vm83_vm3 = vcmask 64512  }
   0x2   :  { %22 = vrot.lane.b32.xlu0 %v398_v0, %s477_s14  ;;  %426 = vmatprep.subr.bf16.mxu1 %v475_v1  ;;  %v521_v4 = vld [vmem:[%s601_s1] sm:$0xff]   ;;  %v526_v5 = vld [vmem:[%s600_s2 + $0x8] sm:$0xff]  ;;  %vm131_vm4 = vcmask 1043456   ;;  %v567_v52 = vld [vmem:[%s600_s2 + $0x10] sm:$0xff]  ;;  %s481_s7 = smov 124  }
   0x3   :  { %107 = vrot.lane.b32.xlu1 %v35_v2, %s478_s19  ;;  %428 = vmatprep.mubr.msk.bf16.mxu1 %vm476_vm0, %v475_v1  ;;  %v15_v7 = vld [vmem:[%s599_s0] sm:$0xff]  ;;  %v16_v8 = vld [vmem:[%s599_s0 + $0x8] sm:$0xff] }
   0x4   :  { %v31_v13 = vld [vmem:[%s601_s1 + $0x8] sm:$0xf] }
   0x5   :  { %v406_v53 = vcombine.low %v31_v13, %v31_v13 }
   0x6   :  { %24 = vrot.lane.b32.xlu0 %v399_v3, %s477_s14 }
   0x7   :  { %111 = vrot.lane.b32.xlu1 %v35_v2, %s479_s22 }
   0xa   :  { %126 = vrot.lane.b32.xlu0 %v521_v4, %s478_s19 }
   0xb   :  { %277 = vrot.lane.b32.xlu1 %v526_v5, %s480_s25 }
   0xe   :  { %279 = vrot.lane.b32.xlu0 %v567_v52, %s480_s25 }
   0xf   :  { %116 = vrot.lane.b32.xlu1 %v35_v2, %s480_s25 }
  0x12   :  { %292 = vrot.lane.b32.xlu0 %v406_v53, %s478_s19 }
  0x13   :  { %383 = vrot.lane.b32.xlu1 %v526_v5, %s478_s19 }
  0x74   :  { %v23_v6 = vpop.permute.xlu0 %22 }
  0x75   :  { %v542_v10 = vsel %vm28_vm1, %v15_v7, %v23_v6  ;;  %v108_v35 = vpop.permute.xlu1 %107 }
  0x78   :  { %v25_v9 = vpop.permute.xlu0 %24 }
  0x79   :  { %v545_v11 = vsel %vm28_vm1, %v16_v8, %v25_v9  ;;  %v112_v38 = vpop.permute.xlu1 %111 }
  0x7a   :  { %v38_v12 = vpack.c.bf16 %v545_v11, %v542_v10 }
  0x7c   :  { %421 = vmatpush3.bf16.msra.mxu0 %v38_v12  ;;  %v127_v50 = vpop.permute.xlu0 %126 }
  0x7d   :  { %432 = vmatprep.subr.bf16.mxu0 %v475_v1  ;;  %v558_v39 = vpop.permute.xlu1 %277 }
  0x7f   :  { %423 = vmatmul.mubr.msk.bf16.vlgmr.msra.gmra.mrb[0].mxu0 %vm39_vm2, %v31_v13 }
  0x80   :  { %434 = vmatprep.mubr.msk.bf16.mxu0 %vm476_vm0, %v475_v1  ;;  %v280_v8 = vpop.permute.xlu0 %279 }
  0x81   :  { %v117_v42 = vpop.permute.xlu1 %116 }
  0x84   :  { %v293_v9 = vpop.permute.xlu0 %292 }
 0x152   :  { %v77_v14 = vpop.f32.mrb[0].mxu0 }
 0x153   :  { %v84_v15 = vsel %vm83_vm3, %v77_v14, 0.0  ;;  %v424_v16 = vpop.f32.mrb[1].mxu0 }
 0x154   :  { %v85_v17 = vrot.slane %v84_v15, 4  ;;  %v80_v18 = vpop.f32.mrb[2].mxu0 }
 0x155   :  { %v425_v19 = vpop.f32.mrb[3].mxu0 }
 0x156   :  { %v86_v20 = vadd.f32 %v85_v17, %v84_v15 }
 0x158   :  { %v87_v21 = vrot.slane %v86_v20, 2 }
 0x15a   :  { %v88_v22 = vadd.f32 %v87_v21, %v86_v20 }
 0x15c   :  { %v89_v23 = vrot.slane %v88_v22, 1 }
 0x15e   :  { %v90_v24 = vadd.f32 %v89_v23, %v88_v22 }
 0x160   :  { %v92_v25 = vmul.f32 0.125, %v90_v24 }
 0x162   :  { %v93_v26 = vsub.f32 %v77_v14, %v92_v25 }
 0x164   :  { %v94_v27 = vmul.f32 %v93_v26, %v93_v26 }
 0x166   :  { %v95_v28 = vsel %vm83_vm3, %v94_v27, 0.0 }
 0x167   :  { %v96_v29 = vrot.slane %v95_v28, 4 }
 0x169   :  { %v97_v30 = vadd.f32 %v96_v29, %v95_v28 }
 0x16b   :  { %v98_v31 = vrot.slane %v97_v30, 2 }
 0x16d   :  { %v99_v32 = vadd.f32 %v98_v31, %v97_v30 }
 0x16f   :  { %v100_v33 = vrot.slane %v99_v32, 1 }
 0x171   :  { %v101_v34 = vadd.f32 %v100_v33, %v99_v32 }
 0x173   :  { %v102_v36 = vmul.f32 0.125, %v101_v34 }
 0x175   :  { %v103_v37 = vadd.f32 1e-05, %v102_v36 }
 0x177   :  { %459 = vrsqrt.f32 %v103_v37 }
 0x181   :  { %v460_v40 = vpop.eup %459 }
 0x182   :  { %v105_v41 = vmul.f32 %v460_v40, %v93_v26 }
 0x184   :  { %v110_v43 = vmul.f32 %v108_v35, %v105_v41  ;;  %v115_v44 = vmul.f32 %v105_v41, %v35_v2 }
 0x186   :  { %v114_v45 = vadd.f32 %v112_v38, %v110_v43  ;;  %v119_v46 = vadd.f32 %v117_v42, %v115_v44 }
 0x188   :  { %v120_v47 = vpack.c.bf16 %v114_v45, %v114_v45  ;;  %v288_v48 = vpack.c.bf16 %v119_v46, %v119_v46 }
 0x18a   :  { %v133_v49 = vsel %vm131_vm4, %v120_v47, 0  ;;  %v298_v51 = vsel %vm131_vm4, %v288_v48, 0 }
 0x18b   :  { %427 = vmatpush3.bf16.msra.mxu1 %v133_v49 }
 0x18c   :  { %438 = vmatprep.subr.bf16.mxu1 %v475_v1 }
 0x18e   :  { %429 = vmatmul.mubr.msk.bf16.vlgmr.msra.gmra.mrb[0].mxu1 %vm83_vm3, %v127_v50 }
 0x18f   :  { %439 = vmatpush3.bf16.msra.mxu1 %v298_v51  ;;  %440 = vmatprep.mubr.msk.bf16.mxu1 %vm476_vm0, %v475_v1 }
 0x196   :  { %441 = vmatmul.mubr.msk.bf16.vlgmr.msra.gmra.mrb[4].mxu1 %vm83_vm3, %v293_v9 }
 0x261   :  { %v169_v54 = vpop.f32.mrb[0].mxu1 }
 0x262   :  { %v179_v55 = vmul.f32 0.70710677, %v169_v54  ;;  %v430_v56 = vpop.f32.mrb[1].mxu1  ;;  %v176_v63 = vmul.f32 0.5, %v169_v54 }
 0x263   :  { %v172_v57 = vpop.f32.mrb[2].mxu1 }
 0x264   :  { %461 = verf.f32 %v179_v55  ;;  %v180_v58 = vmul.f32 0.70710677, %v172_v57  ;;  %v431_v59 = vpop.f32.mrb[3].mxu1  ;;  %v177_v0 = vmul.f32 0.5, %v172_v57 }
 0x265   :  { %v34_v59 = vld [vmem:[%s601_s1 + $0x10] sm:$0xf] }
 0x266   :  { %463 = verf.f32 %v180_v58 }
 0x26e   :  { %v462_v60 = vpop.eup %461 }
 0x26f   :  { %v183_v61 = vadd.f32 1.0, %v462_v60  ;;  %v334_v60 = vpop.f32.mrb[4].mxu1 }
 0x270   :  { %v464_v62 = vpop.eup %463 }
 0x271   :  { %v184_v2 = vadd.f32 1.0, %v464_v62  ;;  %v185_v3 = vmul.f32 %v183_v61, %v176_v63  ;;  %v442_v61 = vpop.f32.mrb[5].mxu1  ;;  %v384_v63 = vpop.permute.xlu1 %383 }
 0x273   :  { %v186_v6 = vmul.f32 %v184_v2, %v177_v0 }
 0x275   :  { %v187_v7 = vpack.c.bf16 %v186_v6, %v185_v3 }
 0x277   :  { %433 = vmatpush3.bf16.msra.mxu0 %v187_v7 }
 0x278   :  { %444 = vmatprep.subr.bf16.mxu0 %v475_v1 }
 0x27a   :  { %435 = vmatmul.mubr.msk.bf16.vlgmr.msra.gmra.mrb[4].mxu0 %vm39_vm2, %v521_v4 }
 0x27b   :  { %446 = vmatprep.mubr.msk.bf16.mxu0 %vm476_vm0, %v475_v1 }
 0x34d   :  { %v225_v12 = vpop.f32.mrb[4].mxu0 }
 0x34e   :  { %v404_v13 = vmul.f32 -1.442695, %v225_v12  ;;  %v436_v14 = vpop.f32.mrb[5].mxu0 }
 0x34f   :  { %v228_v15 = vpop.f32.mrb[6].mxu0 }
 0x350   :  { %465 = vpow2.f32 %v404_v13  ;;  %v405_v16 = vmul.f32 -1.442695, %v228_v15  ;;  %v437_v17 = vpop.f32.mrb[7].mxu0 }
 0x352   :  { %467 = vpow2.f32 %v405_v16 }
 0x35a   :  { %v466_v18 = vpop.eup %465 }
 0x35b   :  { %v238_v19 = vadd.f32 1.0, %v466_v18 }
 0x35c   :  { %v468_v20 = vpop.eup %467 }
 0x35d   :  { %469 = vrcp.f32 %v238_v19  ;;  %v239_v4 = vadd.f32 1.0, %v468_v20 }
 0x35f   :  { %471 = vrcp.f32 %v239_v4 }
 0x367   :  { %v470_v21 = vpop.eup %469 }
 0x368   :  { %v244_v22 = vsel %vm83_vm3, %v470_v21, 0.0 }
 0x369   :  { %v472_v1 = vpop.eup %471 }
 0x36a   :  { %v245_v23 = vsel %vm83_vm3, %v472_v1, 0.0 }
 0x36b   :  { %v246_v24 = vadd.f32 %v245_v23, %v244_v22 }
 0x36d   :  { %v247_v25 = vrot.slane %v246_v24, 4 }
 0x36f   :  { %v248_v26 = vadd.f32 %v247_v25, %v246_v24 }
 0x371   :  { %v249_v27 = vrot.slane %v248_v26, 2 }
 0x373   :  { %v250_v28 = vadd.f32 %v249_v27, %v248_v26 }
 0x375   :  { %v251_v29 = vrot.slane %v250_v28, 1 }
 0x377   :  { %v252_v30 = vadd.f32 %v251_v29, %v250_v28 }
 0x379   :  { %v254_v31 = vmul.f32 0.0625, %v252_v30 }
 0x37b   :  { %v255_v32 = vsub.f32 %v470_v21, %v254_v31  ;;  %v256_v33 = vsub.f32 %v472_v1, %v254_v31 }
 0x37d   :  { %v257_v34 = vmul.f32 %v255_v32, %v255_v32  ;;  %v258_v35 = vmul.f32 %v256_v33, %v256_v33 }
 0x37f   :  { %v259_v36 = vsel %vm83_vm3, %v257_v34, 0.0  ;;  %v260_v37 = vsel %vm83_vm3, %v258_v35, 0.0 }
 0x380   :  { %v261_v38 = vadd.f32 %v260_v37, %v259_v36 }
 0x382   :  { %v262_v40 = vrot.slane %v261_v38, 4 }
 0x384   :  { %v263_v41 = vadd.f32 %v262_v40, %v261_v38 }
 0x386   :  { %v264_v42 = vrot.slane %v263_v41, 2 }
 0x388   :  { %v265_v43 = vadd.f32 %v264_v42, %v263_v41 }
 0x38a   :  { %v266_v44 = vrot.slane %v265_v43, 1 }
 0x38c   :  { %v267_v45 = vadd.f32 %v266_v44, %v265_v43 }
 0x38e   :  { %v268_v46 = vmul.f32 0.0625, %v267_v45 }
 0x390   :  { %v269_v47 = vadd.f32 1e-05, %v268_v46 }
 0x392   :  { %473 = vrsqrt.f32 %v269_v47 }
 0x39c   :  { %v474_v48 = vpop.eup %473 }
 0x39d   :  { %v271_v49 = vmul.f32 %v474_v48, %v255_v32  ;;  %v272_v50 = vmul.f32 %v474_v48, %v256_v33 }
 0x39f   :  { %v273_v51 = vmul.f32 %v271_v49, %v526_v5  ;;  %v274_v53 = vmul.f32 %v272_v50, %v567_v52  ;;  %v337_v5 = vpop.f32.mrb[6].mxu1 }
 0x3a0   :  { %v443_v62 = vpop.f32.mrb[7].mxu1 }
 0x3a1   :  { %v283_v54 = vadd.f32 %v558_v39, %v273_v51  ;;  %v284_v55 = vadd.f32 %v280_v8, %v274_v53 }
 0x3a3   :  { %v285_v56 = vmul.f32 %v283_v54, %v542_v10  ;;  %v286_v57 = vmul.f32 %v284_v55, %v545_v11 }
 0x3a5   :  { %v287_v58 = vpack.c.bf16 %v286_v57, %v285_v56 }
 0x3a7   :  { %445 = vmatpush3.bf16.msra.mxu0 %v287_v58 }
 0x3aa   :  { %447 = vmatmul.mubr.msk.bf16.vlgmr.msra.gmra.mrb[8].mxu0 %vm39_vm2, %v34_v59 }
 0x47d   :  { %v377_v52 = vpop.f32.mrb[8].mxu0 }
 0x47e   :  { %v378_v39 = vadd.f32 %v377_v52, %v334_v60  ;;  %v448_v0 = vpop.f32.mrb[9].mxu0 }
 0x47f   :  { %v380_v2 = vpop.f32.mrb[10].mxu0 }
 0x480   :  { %v449_v10 = vpop.f32.mrb[11].mxu0  ;;  %v386_v3 = vadd.f32 %v384_v63, %v378_v39 }
 0x482   :  { %389 = vrot.lane.b32.xlu0 %v386_v3, %s481_s7  ;;  %387 = vst.msk [vmem:[%s602_s3] sm:$0xff] %vm28_vm1, %v386_v3 }
 0x4f4   :  { %v390_v11 = vpop.permute.xlu0 %389 }
 0x4f5   :  { %409 = vst.msk [vmem:[%s602_s3 + $0x8] sm:$0xff] %vm28_vm1, %v390_v11 }

</bundles_post_ra>
